<compile_context>
chip_gen: v7x
topology: tpu7x:2x2x1
jax: 0.10.0
libtpu: 0.0.40
codegen_flags: <defaults>
</compile_context>

<pallas_src>
import functools

import jax
import jax.numpy as jnp
from jax import lax
from jax.experimental import pallas as pl
from jax.experimental.pallas import tpu as pltpu


_MATMUL_DTYPE = jnp.bfloat16   # matmul operands travel as bf16; accumulate in f32
_VMEM_LIMIT = 32 * 1024 * 1024


# ----------------------------------------------------------------------------
# Small helpers
# ----------------------------------------------------------------------------
def _round_up(v, m):
    return (v + m - 1) // m * m


def _pad_tile(dim, align, max_tile):
    """Return (padded_dim, tile) with tile | padded_dim and tile % align == 0."""
    p = _round_up(dim, align)
    if p <= max_tile:
        return p, p
    return _round_up(dim, max_tile), max_tile


def _pad2(a, rows, cols):
    r, c = a.shape
    if rows == r and cols == c:      # skip pad glue when already aligned
        return a
    return jnp.pad(a, ((0, rows - r), (0, cols - c)))


def _apply_act(r, activation):
    if activation == "relu":
        return jnp.maximum(r, 0.0)
    if activation == "leaky_relu":
        return jnp.where(r >= 0.0, r, 0.01 * r)
    if activation == "sigmoid":
        return jax.nn.sigmoid(r)
    return r


# ----------------------------------------------------------------------------
# Pallas kernel 1: fused Linear (+bias, +activation).
# Weight arrives in torch (out, in) layout; the wrapper pre-transposes it to
# (K, N) so no in-kernel transpose is needed.
# ----------------------------------------------------------------------------
def _linear_kernel(x_ref, w_ref, b_ref, o_ref, *, activation):
    r = jnp.dot(x_ref[...], w_ref[...], preferred_element_type=jnp.float32)
    r = r + b_ref[...]                       # (tm, tn) + (1, tn)
    o_ref[...] = _apply_act(r, activation).astype(o_ref.dtype)


def _linear_kernel_acc(x_ref, w_ref, b_ref, o_ref, acc_ref, *, activation):
    k = pl.program_id(2)

    @pl.when(k == 0)
    def _():
        acc_ref[...] = jnp.zeros_like(acc_ref)

    acc_ref[...] += jnp.dot(x_ref[...], w_ref[...],
                            preferred_element_type=jnp.float32)

    @pl.when(k == pl.num_programs(2) - 1)
    def _():
        r = acc_ref[...] + b_ref[...]
        o_ref[...] = _apply_act(r, activation).astype(o_ref.dtype)


def pallas_linear(x, weight, bias=None, activation="none"):
    """y = act(x @ weight.T + bias); weight is (out_features, in_features)."""
    M, K = x.shape
    N = weight.shape[0]
    Mp, tm = _pad_tile(M, 16, 256)        # 16: bf16 sublane pack
    Np, tn = _pad_tile(N, 128, 1024)      # whole-N lane-dense block
    Kp, tk = _pad_tile(K, 128, 1024)      # whole-K in every call of this model

    xp = _pad2(x.astype(_MATMUL_DTYPE), Mp, Kp)
    wt = _pad2(weight.T.astype(_MATMUL_DTYPE), Kp, Np)
    b = jnp.zeros((N,), jnp.float32) if bias is None else bias.astype(jnp.float32)
    bp = _pad2(b.reshape(1, N), 1, Np)

    n_k = Kp // tk
    flops = 2 * Mp * Np * Kp
    bytes_accessed = 2 * (Mp * Kp + Kp * Np) + 4 * Mp * Np
    cost = pl.CostEstimate(flops=flops, transcendentals=0,
                           bytes_accessed=bytes_accessed)

    if n_k == 1:
        out = pl.pallas_call(
            functools.partial(_linear_kernel, activation=activation),
            out_shape=jax.ShapeDtypeStruct((Mp, Np), jnp.float32),
            grid_spec=pl.GridSpec(
                grid=(Mp // tm, Np // tn),
                in_specs=[
                    pl.BlockSpec((tm, Kp), lambda i, j: (i, 0)),
                    pl.BlockSpec((Kp, tn), lambda i, j: (0, j)),
                    pl.BlockSpec((1, tn), lambda i, j: (0, j)),
                ],
                out_specs=pl.BlockSpec((tm, tn), lambda i, j: (i, j)),
            ),
            compiler_params=pltpu.CompilerParams(
                dimension_semantics=("parallel", "parallel"),
                vmem_limit_bytes=_VMEM_LIMIT),
            cost_estimate=cost,
        )(xp, wt, bp)
    else:
        # Fallback (not hit in this model): K-axis accumulation with scratch.
        out = pl.pallas_call(
            functools.partial(_linear_kernel_acc, activation=activation),
            out_shape=jax.ShapeDtypeStruct((Mp, Np), jnp.float32),
            grid_spec=pltpu.PrefetchScalarGridSpec(
                num_scalar_prefetch=0,
                grid=(Mp // tm, Np // tn, n_k),
                in_specs=[
                    pl.BlockSpec((tm, tk), lambda i, j, k: (i, k)),
                    pl.BlockSpec((tk, tn), lambda i, j, k: (k, j)),
                    pl.BlockSpec((1, tn), lambda i, j, k: (0, j)),
                ],
                out_specs=pl.BlockSpec((tm, tn), lambda i, j, k: (i, j)),
                scratch_shapes=[pltpu.VMEM((tm, tn), jnp.float32)],
            ),
            compiler_params=pltpu.CompilerParams(
                dimension_semantics=("parallel", "parallel", "arbitrary"),
                vmem_limit_bytes=_VMEM_LIMIT),
            cost_estimate=cost,
        )(xp, wt, bp)

    if Mp != M or Np != N:
        out = out[:M, :N]
    return out


# ----------------------------------------------------------------------------
# Pallas kernel 2: fused two-layer MLP (hidden never leaves VMEM).
# Used for the transformer FFN and the (seq-len-1) V-proj -> out-proj chain.
# ----------------------------------------------------------------------------
def _mlp2_kernel(x_ref, w1_ref, b1_ref, w2_ref, b2_ref, o_ref, *, act1, act2):
    h = jnp.dot(x_ref[...], w1_ref[...], preferred_element_type=jnp.float32)
    h = _apply_act(h + b1_ref[...], act1)
    r = jnp.dot(h.astype(w2_ref.dtype), w2_ref[...],
                preferred_element_type=jnp.float32)
    o_ref[...] = _apply_act(r + b2_ref[...], act2).astype(o_ref.dtype)


def pallas_mlp2(x, w1, b1, w2, b2, act1="none", act2="none"):
    """act2(act1(x @ w1.T + b1) @ w2.T + b2); w1, w2 in torch (out, in) layout."""
    M, K = x.shape
    H = w1.shape[0]
    N = w2.shape[0]
    Mp, tm = _pad_tile(M, 16, 256)
    Kp = _round_up(K, 128)
    Hp = _round_up(H, 128)
    Np = _round_up(N, 128)

    xp = _pad2(x.astype(_MATMUL_DTYPE), Mp, Kp)
    w1t = _pad2(w1.T.astype(_MATMUL_DTYPE), Kp, Hp)
    w2t = _pad2(w2.T.astype(_MATMUL_DTYPE), Hp, Np)
    b1v = jnp.zeros((H,), jnp.float32) if b1 is None else b1.astype(jnp.float32)
    b2v = jnp.zeros((N,), jnp.float32) if b2 is None else b2.astype(jnp.float32)
    b1p = _pad2(b1v.reshape(1, H), 1, Hp)
    b2p = _pad2(b2v.reshape(1, N), 1, Np)

    out = pl.pallas_call(
        functools.partial(_mlp2_kernel, act1=act1, act2=act2),
        out_shape=jax.ShapeDtypeStruct((Mp, Np), jnp.float32),
        grid_spec=pl.GridSpec(
            grid=(Mp // tm,),
            in_specs=[
                pl.BlockSpec((tm, Kp), lambda i: (i, 0)),
                pl.BlockSpec((Kp, Hp), lambda i: (0, 0)),
                pl.BlockSpec((1, Hp), lambda i: (0, 0)),
                pl.BlockSpec((Hp, Np), lambda i: (0, 0)),
                pl.BlockSpec((1, Np), lambda i: (0, 0)),
            ],
            out_specs=pl.BlockSpec((tm, Np), lambda i: (i, 0)),
        ),
        compiler_params=pltpu.CompilerParams(
            dimension_semantics=("parallel",),
            vmem_limit_bytes=_VMEM_LIMIT),
        cost_estimate=pl.CostEstimate(
            flops=2 * Mp * (Kp * Hp + Hp * Np), transcendentals=0,
            bytes_accessed=2 * (Mp * Kp + Kp * Hp + Hp * Np) + 4 * Mp * Np),
    )(xp, w1t, b1p, w2t, b2p)
    if Mp != M or Np != N:
        out = out[:M, :N]
    return out


# ----------------------------------------------------------------------------
# Pallas kernel 3: fused late-concat regression head (create + RegressionModel1).
# ----------------------------------------------------------------------------
def _edge_head_kernel(xs_ref, xd_ref, w1s_ref, w1d_ref, b1_ref, w4_ref, b4_ref,
                      o_ref):
    # fc1 over the virtual concat [x_src | x_dst] = two dots + add
    # (the (E, 2*(512+md)) concatenated edge features never touch HBM).
    h = jnp.dot(xs_ref[...], w1s_ref[...], preferred_element_type=jnp.float32)
    h = h + jnp.dot(xd_ref[...], w1d_ref[...], preferred_element_type=jnp.float32)
    h = h + b1_ref[...]
    h = jnp.where(h >= 0.0, h, 0.01 * h)      # F.leaky_relu (default slope 0.01)
    # dropout1(p=0.5) is inference-mode identity.
    # fc4 has output width 1: VPU multiply + lane reduction instead of a
    # 1-column MXU dot (which would use 1/256 of the MXU).
    y = jnp.sum(h * w4_ref[...], axis=-1, keepdims=True) + b4_ref[...]
    o_ref[...] = y.astype(o_ref.dtype)


def edge_regression_head(x_src, x_dst, w1, b1, w4, b4):
    """Per-edge: fc4(leaky_relu(fc1(cat(x_src, x_dst)))) fully fused in VMEM."""
    E, D = x_src.shape
    H = w1.shape[0]                       # 512 + metadata_dim
    Ep, te = _pad_tile(E, 16, 256)
    Dp = _round_up(D, 128)
    Hp = _round_up(H, 128)

    xs = _pad2(x_src.astype(_MATMUL_DTYPE), Ep, Dp)
    xd = _pad2(x_dst.astype(_MATMUL_DTYPE), Ep, Dp)
    w1s = _pad2(w1[:, :D].T.astype(_MATMUL_DTYPE), Dp, Hp)   # (K, N) layout
    w1d = _pad2(w1[:, D:].T.astype(_MATMUL_DTYPE), Dp, Hp)
    b1p = _pad2(b1.astype(jnp.float32).reshape(1, H), 1, Hp)
    w4p = _pad2(w4.astype(jnp.float32).reshape(1, H), 1, Hp)  # f32 epilogue row
    b4p = b4.astype(jnp.float32).reshape(1, 1)

    out = pl.pallas_call(
        _edge_head_kernel,
        out_shape=jax.ShapeDtypeStruct((Ep, 1), jnp.float32),
        grid_spec=pl.GridSpec(
            grid=(Ep // te,),
            in_specs=[
                pl.BlockSpec((te, Dp), lambda e: (e, 0)),
                pl.BlockSpec((te, Dp), lambda e: (e, 0)),
                pl.BlockSpec((Dp, Hp), lambda e: (0, 0)),
                pl.BlockSpec((Dp, Hp), lambda e: (0, 0)),
                pl.BlockSpec((1, Hp), lambda e: (0, 0)),
                pl.BlockSpec((1, Hp), lambda e: (0, 0)),
                pl.BlockSpec((1, 1), lambda e: (0, 0)),
            ],
            out_specs=pl.BlockSpec((te, 1), lambda e: (e, 0)),
        ),
        compiler_params=pltpu.CompilerParams(
            dimension_semantics=("parallel",),
            vmem_limit_bytes=_VMEM_LIMIT),
    )(xs, xd, w1s, w1d, b1p, w4p, b4p)
    return out[:E, :]


# ----------------------------------------------------------------------------
# XLA glue ops (inference mode).
# TODO(synk): conv2d / maxpool / batchnorm / layer-norm / GAT segment-softmax
# stay as XLA ops; at these sizes a dedicated Pallas kernel would lose to
# pallas_call fixed overhead.
# ----------------------------------------------------------------------------
def conv2d(x, w, b):
    y = lax.conv_general_dilated(x, w, (1, 1), ((1, 1), (1, 1)),
                                 dimension_numbers=("NCHW", "OIHW", "NCHW"))
    return y + b.reshape(1, -1, 1, 1)


def batchnorm(x, p, eps=1e-5):
    scale = p["gamma"] / jnp.sqrt(p["var"] + eps)
    shift = p["beta"] - p["mean"] * scale
    return x * scale.reshape(1, -1, 1, 1) + shift.reshape(1, -1, 1, 1)


def maxpool_2x2_pad1(x):
    return lax.reduce_window(x, -jnp.inf, lax.max, (1, 1, 2, 2), (1, 1, 2, 2),
                             ((0, 0), (0, 0), (1, 1), (1, 1)))


def relu(x):
    return jnp.maximum(x, 0.0)


def layer_norm(x, g, b, eps=1e-5):
    mu = x.mean(-1, keepdims=True)
    var = ((x - mu) ** 2).mean(-1, keepdims=True)
    return (x - mu) * lax.rsqrt(var + eps) * g + b


# ----------------------------------------------------------------------------
# SE_CNN
# ----------------------------------------------------------------------------
def se_block(x, p):
    # TODO(synk): the SE FCs are (N,16)x(16,1)-scale problems; a pallas_call is
    # pure launch overhead here, so they stay as XLA dots fused with the scale.
    s = x.mean(axis=(2, 3))                                   # AdaptiveAvgPool2d(1)
    s = jnp.maximum(jnp.matmul(s, p["fc1"]["w"].T) + p["fc1"]["b"], 0.0)
    s = jax.nn.sigmoid(jnp.matmul(s, p["fc2"]["w"].T) + p["fc2"]["b"])
    return x * s[:, :, None, None]


def cnn1_block(x, p):
    x = conv2d(x, p["conv"]["w"], p["conv"]["b"])
    x = batchnorm(x, p["bn"])
    x = relu(x)
    return maxpool_2x2_pad1(x)


def se_cnn(x, p):
    x = relu(conv2d(x, p["conv1"]["w"], p["conv1"]["b"]))
    x = se_block(x, p["se1"])
    x = cnn1_block(x, p["cnn1"])
    x = cnn1_block(x, p["cnn2"])
    x = se_block(x, p["se2"])
    x = cnn1_block(x, p["cnn3"])
    x = cnn1_block(x, p["cnn4"])
    x = x.reshape(x.shape[0], -1)
    return pallas_linear(x, p["fc"]["w"], p["fc"]["b"])


# ----------------------------------------------------------------------------
# TransformerModel (nn.TransformerEncoder, post-norm, activation=relu)
# ----------------------------------------------------------------------------
def encoder_layer(x, p):
    # x: (S, B, D) with S == 1.  Softmax over a single key is the identity, so
    # the multi-head attention output is exactly out_proj(V): the Q/K matmuls,
    # attention einsums, softmax and head transposes are dead work and dropped.
    S, B, D = x.shape
    x2 = x.reshape(S * B, D)
    wv = p["in_proj"]["w"][2 * D:]            # V third of in_proj
    bv = p["in_proj"]["b"][2 * D:]
    attn = pallas_mlp2(x2, wv, bv, p["out_proj"]["w"], p["out_proj"]["b"])
    x = layer_norm(x + attn.reshape(S, B, D), p["ln1_g"], p["ln1_b"])
    # FFN lin1 + relu + lin2 fused; the (M, 512) hidden stays in VMEM.
    h = pallas_mlp2(x.reshape(S * B, D), p["lin1"]["w"], p["lin1"]["b"],
                    p["lin2"]["w"], p["lin2"]["b"], act1="relu")
    return layer_norm(x + h.reshape(S, B, D), p["ln2_g"], p["ln2_b"])


def transformer_model(x, p):                  # x: (N, 1, D)
    N, S, D = x.shape
    inp = pallas_linear(x.reshape(N * S, D), p["fc1"]["w"],
                        p["fc1"]["b"]).reshape(N, S, -1)
    h = x.transpose(1, 0, 2)                  # (S, N, D), batch_first=False
    for lp in p["layers"]:
        h = encoder_layer(h, lp)
    h = h.transpose(1, 0, 2)
    return relu(h + inp)


# ----------------------------------------------------------------------------
# MultiGAT (GATConv semantics: add_self_loops, leaky_relu(0.2), target softmax)
# ----------------------------------------------------------------------------
def gat_aggregate(h, edge_index, p, negative_slope=0.2):
    """Attention aggregation over pre-transformed node features h (N, H, C).
    TODO(synk): segment softmax / scatter-add stay as XLA segment ops."""
    N, heads, out_ch = h.shape
    # PyG GATConv adds self loops (demo graph carries none to remove).
    loops = jnp.arange(N, dtype=edge_index.dtype)
    ei = jnp.concatenate([edge_index, jnp.stack([loops, loops])], axis=1)
    src, dst = ei[0], ei[1]
    a_src = (h * p["att_src"]).sum(-1)        # (N, H)
    a_dst = (h * p["att_dst"]).sum(-1)
    alpha = a_src[src] + a_dst[dst]           # (E, H)
    alpha = jnp.where(alpha >= 0.0, alpha, negative_slope * alpha)
    amax = jax.ops.segment_max(alpha, dst, num_segments=N)
    amax = jnp.where(jnp.isfinite(amax), amax, 0.0)
    ex = jnp.exp(alpha - amax[dst])
    denom = jax.ops.segment_sum(ex, dst, num_segments=N)
    att = ex / (denom[dst] + 1e-16)           # attention dropout: eval identity
    out = jax.ops.segment_sum(h[src] * att[:, :, None], dst, num_segments=N)
    return out.reshape(N, heads * out_ch) + p["bias"]


def multi_gat(x, edge_index, p, heads=4, out_ch=64):
    N = x.shape[0]
    hw = heads * out_ch
    # conv1's linear transform and the residual fc share the same input x:
    # stack them into a single wider pallas_linear call (fewer launches).
    w_stack = jnp.concatenate([p["conv1"]["lin_w"], p["fc"]["w"]], axis=0)
    b_stack = jnp.concatenate([jnp.zeros((hw,), jnp.float32), p["fc"]["b"]])
    hb = pallas_linear(x, w_stack, b_stack)                   # (N, 2*hw)
    h1, res = hb[:, :hw], hb[:, hw:]
    g1 = relu(gat_aggregate(h1.reshape(N, heads, out_ch), edge_index, p["conv1"]))
    h2 = pallas_linear(g1, p["convN"]["lin_w"], None)
    g2 = gat_aggregate(h2.reshape(N, heads, out_ch), edge_index, p["convN"])
    return relu(g2 + res)


# ----------------------------------------------------------------------------
# Full MetaFluAD_late_concat forward
# ----------------------------------------------------------------------------
def metafluad_forward(params, x_img, edge_index, metadata):
    x = se_cnn(x_img, params["se_cnn"])                            # (N, 256)
    x_t = transformer_model(x[:, None, :], params["transformer"])[:, 0, :]
    x_r = multi_gat(x, edge_index, params["gat"])                  # (N, 256)
    feature = jnp.concatenate([x_t, x_r], axis=1)                  # (N, 512)
    x_all = jnp.concatenate([feature, metadata], axis=1)           # (N, 512+md)
    # create(): per-edge cat(x[m], x[n]) + RegressionModel1, fused in one kernel
    x_src = x_all[edge_index[0]]
    x_dst = x_all[edge_index[1]]
    ypre = edge_regression_head(
        x_src, x_dst,
        params["reg"]["fc1"]["w"], params["reg"]["fc1"]["b"],
        params["reg"]["fc4"]["w"], params["reg"]["fc4"]["b"])
    return ypre, feature


# ----------------------------------------------------------------------------
# Deterministic parameter init (PyTorch-style uniform bounds).
# ----------------------------------------------------------------------------
def _uniform(key, shape, bound):
    return jax.random.uniform(key, shape, jnp.float32, -bound, bound)


def init_linear(key, out_dim, in_dim, bias=True):
    k1, k2 = jax.random.split(key)
    b = 1.0 / (in_dim ** 0.5)
    return {"w": _uniform(k1, (out_dim, in_dim), b),
            "b": _uniform(k2, (out_dim,), b) if bias else None}


def init_conv(key, out_ch, in_ch, ksz=3):
    k1, k2 = jax.random.split(key)
    b = 1.0 / ((in_ch * ksz * ksz) ** 0.5)
    return {"w": _uniform(k1, (out_ch, in_ch, ksz, ksz), b),
            "b": _uniform(k2, (out_ch,), b)}


def init_bn(c):
    return {"gamma": jnp.ones((c,), jnp.float32), "beta": jnp.zeros((c,), jnp.float32),
            "mean": jnp.zeros((c,), jnp.float32), "var": jnp.ones((c,), jnp.float32)}


def init_se(key, c, r=16):
    k1, k2 = jax.random.split(key)
    return {"fc1": init_linear(k1, c // r, c), "fc2": init_linear(k2, c, c // r)}


def init_cnn1(key, in_ch, out_ch):
    return {"conv": init_conv(key, out_ch, in_ch), "bn": init_bn(out_ch)}


def init_encoder_layer(key, d, dff):
    ks = jax.random.split(key, 4)
    return {"in_proj": init_linear(ks[0], 3 * d, d),
            "out_proj": init_linear(ks[1], d, d),
            "lin1": init_linear(ks[2], dff, d),
            "lin2": init_linear(ks[3], d, dff),
            "ln1_g": jnp.ones((d,), jnp.float32), "ln1_b": jnp.zeros((d,), jnp.float32),
            "ln2_g": jnp.ones((d,), jnp.float32), "ln2_b": jnp.zeros((d,), jnp.float32)}


def init_gat_conv(key, in_dim, out_ch, heads):
    ks = jax.random.split(key, 3)
    bnd = 1.0 / (out_ch ** 0.5)
    return {"lin_w": init_linear(ks[0], heads * out_ch, in_dim, bias=False)["w"],
            "att_src": _uniform(ks[1], (1, heads, out_ch), bnd),
            "att_dst": _uniform(ks[2], (1, heads, out_ch), bnd),
            "bias": jnp.zeros((heads * out_ch,), jnp.float32)}


def init_params(key, metadata_dim, cnn_outdim, img_hw):
    ks = jax.random.split(key, 15)
    H, W = img_hw

    def pooled(v):                      # four MaxPool2d(2, 2, padding=1) stages
        for _ in range(4):
            v = v // 2 + 1
        return v

    # fc in-dim derived from input spatial size (original hard-codes 32*22*8
    # for its 322x98 inputs); architecture otherwise identical.
    flat_dim = 32 * pooled(H) * pooled(W)
    se_cnn_p = {
        "conv1": init_conv(ks[0], 16, 1),
        "se1": init_se(ks[1], 16), "se2": init_se(ks[2], 32),
        "cnn1": init_cnn1(ks[3], 16, 16), "cnn2": init_cnn1(ks[4], 16, 32),
        "cnn3": init_cnn1(ks[5], 32, 32), "cnn4": init_cnn1(ks[6], 32, 32),
        "fc": init_linear(ks[7], cnn_outdim, flat_dim),
    }
    d, dff, n_layers, heads, t_out = cnn_outdim, 512, 2, 4, 64
    tr_p = {"fc1": init_linear(ks[8], heads * t_out, d),
            "layers": [init_encoder_layer(k, d, dff)
                       for k in jax.random.split(ks[9], n_layers)]}
    gat_p = {"conv1": init_gat_conv(ks[10], cnn_outdim, 64, 4),
             "convN": init_gat_conv(ks[11], 4 * 64, 64, 4),
             "fc": init_linear(ks[12], 4 * 64, cnn_outdim)}
    D = 512 + metadata_dim
    reg_p = {"fc1": init_linear(ks[13], D, 2 * D), "fc4": init_linear(ks[14], 1, D)}
    return {"se_cnn": se_cnn_p, "transformer": tr_p, "gat": gat_p, "reg": reg_p}


# ----------------------------------------------------------------------------
if __name__ == "__main__":
    key = jax.random.PRNGKey(0)
    k_p, k_x, k_m, k_t1, k_t2, k_t3, k_t4 = jax.random.split(key, 7)

    num_nodes, metadata_dim, cnn_outdim = 12, 8, 256
    H = W = 16
    params = init_params(k_p, metadata_dim, cnn_outdim, (H, W))

    x_img = jax.random.normal(k_x, (num_nodes, 1, H, W), jnp.float32)
    metadata = jax.random.normal(k_m, (num_nodes, metadata_dim), jnp.float32)
    idx = jnp.arange(num_nodes, dtype=jnp.int32)
    nxt = (idx + 1) % num_nodes
    edge_index = jnp.concatenate(
        [jnp.stack([idx, nxt]), jnp.stack([nxt, idx])], axis=1)   # (2, 24)

    # --- unit-check the Pallas kernels against plain-JAX references ---
    TOL = dict(atol=3e-2, rtol=3e-2)   # bf16 matmul operands, f32 accumulation
    HI = jax.lax.Precision.HIGHEST

    xt = jax.random.normal(k_t1, (13, 70), jnp.float32)
    lw = jax.random.normal(k_t2, (33, 70), jnp.float32) * 0.1
    lb = jax.random.normal(k_t3, (33,), jnp.float32) * 0.1
    ref = jnp.maximum(jnp.matmul(xt, lw.T, precision=HI) + lb, 0.0)
    got = pallas_linear(xt, lw, lb, "relu")
    assert jnp.allclose(got, ref, **TOL), "pallas_linear mismatch"

    xm = jax.random.normal(k_t1, (5, 40), jnp.float32)
    mw1 = jax.random.normal(k_t2, (64, 40), jnp.float32) * 0.1
    mb1 = jax.random.normal(k_t3, (64,), jnp.float32) * 0.1
    mw2 = jax.random.normal(k_t4, (24, 64), jnp.float32) * 0.1
    mb2 = jax.random.normal(k_t2, (24,), jnp.float32) * 0.1
    hid = jnp.maximum(jnp.matmul(xm, mw1.T, precision=HI) + mb1, 0.0)
    ref_m = jnp.matmul(hid, mw2.T, precision=HI) + mb2
    got_m = pallas_mlp2(xm, mw1, mb1, mw2, mb2, act1="relu")
    assert jnp.allclose(got_m, ref_m, **TOL), "pallas_mlp2 mismatch"

    D = 512 + metadata_dim
    xs = jax.random.normal(k_t1, (7, D), jnp.float32)
    xd = jax.random.normal(k_t2, (7, D), jnp.float32)
    w1 = jax.random.normal(k_t3, (D, 2 * D), jnp.float32) * 0.02
    b1 = jnp.full((D,), 0.1, jnp.float32)
    w4 = jax.random.normal(k_t4, (1, D), jnp.float32) * 0.02
    b4 = jnp.full((1,), 0.1, jnp.float32)
    cat = jnp.concatenate([xs, xd], axis=1)
    hh = jnp.matmul(cat, w1.T, precision=HI) + b1
    hh = jnp.where(hh >= 0.0, hh, 0.01 * hh)
    ref_y = jnp.matmul(hh, w4.T, precision=HI) + b4
    got_y = edge_regression_head(xs, xd, w1, b1, w4, b4)
    assert jnp.allclose(got_y, ref_y, **TOL), "edge_regression_head mismatch"

    # --- full forward ---
    fwd = jax.jit(metafluad_forward)
    ypre, feature = fwd(params, x_img, edge_index, metadata)
    ypre, feature = jax.block_until_ready((ypre, feature))

    assert ypre.shape == (edge_index.shape[1], 1)
    assert feature.shape == (num_nodes, 2 * cnn_outdim)
    assert bool(jnp.all(jnp.isfinite(ypre))) and bool(jnp.all(jnp.isfinite(feature)))
    print("KERNEL_OK")
</pallas_src>

<mosaic_0001>
module attributes {stable_mosaic.version = 11 : i64} {
  func.func @_linear_kernel(%arg0: i32, %arg1: i32, %arg2: memref<16x128xbf16, #tpu.memory_space<vmem>>, %arg3: memref<128x128xbf16, #tpu.memory_space<vmem>>, %arg4: memref<1x128xf32, #tpu.memory_space<vmem>>, %arg5: memref<16x128xf32, #tpu.memory_space<vmem>>) attributes {dimension_semantics = [#tpu.dimension_semantics<parallel>, #tpu.dimension_semantics<parallel>], iteration_bounds = array<i64: 1, 1>, scalar_prefetch = 0 : i64, scratch_operands = 0 : i64, tpu.core_type = #tpu.core_type<tc>, window_params = [{transform_indices = @transform_0, window_bounds = array<i64: 16, 128>}, {transform_indices = @transform_1, window_bounds = array<i64: 128, 128>}, {transform_indices = @transform_2, window_bounds = array<i64: 1, 128>}, {transform_indices = @transform_3, window_bounds = array<i64: 16, 128>}]} {
    %c0 = arith.constant 0 : index
    %c0_0 = arith.constant 0 : index
    %0 = vector.load %arg2[%c0, %c0_0] : memref<16x128xbf16, #tpu.memory_space<vmem>>, vector<16x128xbf16>
    %c0_1 = arith.constant 0 : index
    %c0_2 = arith.constant 0 : index
    %1 = vector.load %arg3[%c0_1, %c0_2] : memref<128x128xbf16, #tpu.memory_space<vmem>>, vector<128x128xbf16>
    %cst = arith.constant dense<0.000000e+00> : vector<16x128xf32>
    %2 = tpu.matmul %0, %1, %cst {dimension_numbers = #tpu.dot_dimension_numbers<[1], [0], [0], [1], [0, 0, 1, 1], [], []>} : vector<16x128xbf16>, vector<128x128xbf16>, vector<16x128xf32> -> vector<16x128xf32>
    %c0_3 = arith.constant 0 : index
    %c0_4 = arith.constant 0 : index
    %3 = vector.load %arg4[%c0_3, %c0_4] : memref<1x128xf32, #tpu.memory_space<vmem>>, vector<1x128xf32>
    %4 = vector.broadcast %3 : vector<1x128xf32> to vector<16x128xf32>
    %5 = arith.addf %2, %4 : vector<16x128xf32>
    %cst_5 = arith.constant 0.000000e+00 : f32
    %6 = vector.broadcast %cst_5 : f32 to vector<16x128xf32>
    %7 = arith.maximumf %5, %6 : vector<16x128xf32>
    %c0_6 = arith.constant 0 : index
    %c0_7 = arith.constant 0 : index
    %8 = vector.load %arg5[%c0_6, %c0_7] : memref<16x128xf32, #tpu.memory_space<vmem>>, vector<16x128xf32>
    tpu.vector_store %arg5[%c0_6, %c0_7], %7 {strides = array<i32>} : memref<16x128xf32, #tpu.memory_space<vmem>>, vector<16x128xf32>,
    return
  }
  func.func @transform_0(%arg0: i32, %arg1: i32) -> (i32, i32) {
    %c0_i32 = arith.constant 0 : i32
    %c0_i32_0 = arith.constant 0 : i32
    return %arg0, %c0_i32 : i32, i32
  }
  func.func @transform_1(%arg0: i32, %arg1: i32) -> (i32, i32) {
    %c0_i32 = arith.constant 0 : i32
    %c0_i32_0 = arith.constant 0 : i32
    return %c0_i32, %arg1 : i32, i32
  }
  func.func @transform_2(%arg0: i32, %arg1: i32) -> (i32, i32) {
    %c0_i32 = arith.constant 0 : i32
    %c0_i32_0 = arith.constant 0 : i32
    return %c0_i32, %arg1 : i32, i32
  }
  func.func @transform_3(%arg0: i32, %arg1: i32) -> (i32, i32) {
    %c0_i32 = arith.constant 0 : i32
    return %arg0, %arg1 : i32, i32
  }
}

</mosaic_0001>

<bundles_post_ra>
// kernel: tpu_custom_call.1
= control target key start
LH: loop header
LB: loop body
LE: loop exit
PB: predicated region body
PF: predicated region fallthrough
CT: control target
= control target key end

     0   :  { %8 = vsyncpa [#allocation3], 0  ;;  %s383_s0 = inlined_call_operand.hbm [shape: bf16[16,128], index: 0, kind: input, shape index: {}]   ;;  %s384_s1 = inlined_call_operand.hbm [shape: bf16[128,128], index: 1, kind: input, shape index: {}]   ;;  %s385_s2 = inlined_call_operand.vmem [shape: f32[1,128], index: 2, kind: input, shape index: {}]   ;;  %s386_s3 = inlined_call_operand.hbm [shape: f32[16,128], index: 3, kind: output, shape index: {}]  }
   0x1   :  { %9 = vsyncpa [#allocation6], 0 }
   0x2   :  { %10 = vsyncpa [#allocation4], 0  ;;  %s315_s12 = smov [#allocation2]   ;;  %s243_s16 = scalar_lea.hbm %s383_s0, 128 }
   0x3   :  { %s16_s13 = sshll.u32 %s315_s12, 4  ;;  %p244_p0 = scmp.ne.s32.totalorder %s383_s0, %s243_s16  ;;  %s17_s13 = int_to_ptr.vmem [resolvable:$true] %s16_s13 }
   0x4   :  { %p247_p1 = scmp.lt.u32.totalorder %s243_s16, %s383_s0 }
   0x6   :  { %p249_p2 = pnand %p247_p1, %p244_p0 }
   0x8   :  { %252 = shalt.err (!%p249_p2)
}
   0x9   :  { %s253_s21 = scalar_lea.vmem %s17_s13, 128  ;;  %p258_p4 = scmp.lt.s32.totalorder %s17_s13, %s17_s13 }
   0xa   :  { %p254_p3 = scmp.ne.s32.totalorder %s17_s13, %s253_s21  ;;  %p259_p5 = scmp.lt.s32.totalorder %s253_s21, %s253_s21 }
   0xc   :  { %p260_p6 = por %p259_p5, %p258_p4 }
   0xe   :  { %p261_p7 = pnand %p260_p6, %p254_p3 }
  0x10   :  { %264 = shalt.err (!%p261_p7)
}
  0x11   :  { %s316_s22 = smov 64   ;;  %s317_s23 = smov 4  }
  0x12   :  { %22 = dma.hbm_to_vmem [thread:$0]  %s383_s0, 128, %s17_s13, [#allocation3], %s316_s22, %s316_s22, %s317_s23  }
  0x13   :  { %s318_s26 = smov [#allocation5]   ;;  %s265_s30 = scalar_lea.hbm %s384_s1, 1024 }
  0x14   :  { %s28_s27 = sshll.u32 %s318_s26, 4  ;;  %p266_p8 = scmp.ne.s32.totalorder %s384_s1, %s265_s30  ;;  %s29_s27 = int_to_ptr.vmem [resolvable:$true] %s28_s27 }
  0x15   :  { %p269_p9 = scmp.lt.u32.totalorder %s265_s30, %s384_s1 }
  0x17   :  { %p271_p10 = pnand %p269_p9, %p266_p8 }
  0x19   :  { %274 = shalt.err (!%p271_p10)
}
  0x1a   :  { %s275_s8 = scalar_lea.vmem %s29_s27, 1024  ;;  %p280_p12 = scmp.lt.s32.totalorder %s29_s27, %s29_s27 }
  0x1b   :  { %p276_p11 = scmp.ne.s32.totalorder %s29_s27, %s275_s8  ;;  %p281_p13 = scmp.lt.s32.totalorder %s275_s8, %s275_s8 }
  0x1d   :  { %p282_p0 = por %p281_p13, %p280_p12 }
  0x1f   :  { %p283_p1 = pnand %p282_p0, %p276_p11 }
  0x21   :  { %286 = shalt.err (!%p283_p1)
}
  0x22   :  { %34 = dma.hbm_to_vmem [thread:$0]  %s384_s1, 1024, %s29_s27, [#allocation6], %s316_s22, %s316_s22, %s317_s23  }
  0x23   :  { %309 = dma.done.wait [#allocation3], 128  }
  0x24   :  { %310 = vsyncadd [#allocation3], 4294967168 }
  0x25   :  { %311 = dma.done.wait [#allocation6], 1024  }
  0x26   :  { %312 = vsyncadd [#allocation6], 4294966272  ;;  %v319_v0 = vmov 0.0   ;;  %vm320_vm0 = vmmov 0   ;;  %v234_v1 = vld [vmem:[#allocation5] sm:$0xff]   ;;  %v235_v2 = vld [vmem:[#allocation5 + $0x8] sm:$0xff]  }
  0x27   :  { %205 = vmatprep.subr.bf16.mxu0 %v319_v0  ;;  %221 = vmatprep.mubr.msk.bf16.mxu0 %vm320_vm0, %v319_v0  ;;  %v236_v3 = vld [vmem:[#allocation5 + $0x10] sm:$0xff]   ;;  %v237_v4 = vld [vmem:[#allocation5 + $0x18] sm:$0xff]   ;;  %v238_v5 = vld [vmem:[#allocation5 + $0x20] sm:$0xff]   ;;  %s321_s11 = smov [#allocation7]  }
  0x28   :  { %206 = vmatpush3.bf16.msra.mxu0 %v234_v1  ;;  %v239_v6 = vld [vmem:[#allocation5 + $0x28] sm:$0xff]   ;;  %v240_v7 = vld [vmem:[#allocation5 + $0x30] sm:$0xff]   ;;  %v241_v8 = vld [vmem:[#allocation5 + $0x38] sm:$0xff]   ;;  %s173_s12 = sshll.u32 %s321_s11, 4  ;;  %s174_s12 = int_to_ptr.vmem [resolvable:$true] %s173_s12 }
  0x29   :  { %207 = vmatprep.subr.bf16.mxu0 %v319_v0  ;;  %v242_v9 = vld [vmem:[#allocation2] sm:$0xff]   ;;  %s287_s13 = scalar_lea.vmem %s174_s12, 256  ;;  %p292_p3 = scmp.lt.s32.totalorder %s174_s12, %s174_s12 }
  0x2a   :  { %v186_v10 = vld [vmem:[%s385_s2] ss:$0 sm:$0xff]  ;;  %p288_p2 = scmp.ne.s32.totalorder %s174_s12, %s287_s13  ;;  %p293_p4 = scmp.lt.s32.totalorder %s287_s13, %s287_s13 }
  0x2c   :  { %208 = vmatpush3.bf16.msra.mxu0 %v235_v2  ;;  %p294_p5 = por %p293_p4, %p292_p3 }
  0x2d   :  { %209 = vmatprep.subr.bf16.mxu0 %v319_v0 }
  0x2e   :  { %p295_p6 = pnand %p294_p5, %p288_p2 }
  0x30   :  { %210 = vmatpush3.bf16.msra.mxu0 %v236_v3 }
  0x31   :  { %211 = vmatprep.subr.bf16.mxu0 %v319_v0 }
  0x34   :  { %212 = vmatpush3.bf16.msra.mxu0 %v237_v4 }
  0x35   :  { %213 = vmatprep.subr.bf16.mxu0 %v319_v0 }
  0x38   :  { %214 = vmatpush3.bf16.msra.mxu0 %v238_v5 }
  0x39   :  { %215 = vmatprep.subr.bf16.mxu0 %v319_v0 }
  0x3c   :  { %216 = vmatpush3.bf16.msra.mxu0 %v239_v6 }
  0x3d   :  { %217 = vmatprep.subr.bf16.mxu0 %v319_v0 }
  0x40   :  { %218 = vmatpush3.bf16.msra.mxu0 %v240_v7 }
  0x41   :  { %219 = vmatprep.subr.bf16.mxu0 %v319_v0 }
  0x44   :  { %220 = vmatpush3.bf16.msra.mxu0 %v241_v8 }
  0x47   :  { %222 = vmatmul.mubr.bf16.vlgmr.msra.gmra.mrb[0].mxu0 %v242_v9 }
 0x11a   :  { %v157_v11 = vpop.f32.mrb[0].mxu0 }
 0x11b   :  { %v158_v12 = vadd.f32 %v186_v10, %v157_v11  ;;  %v223_v13 = vpop.f32.mrb[1].mxu0 }
 0x11c   :  { %v160_v14 = vpop.f32.mrb[2].mxu0 }
 0x11d   :  { %v164_v15 = vmax.f32 %v158_v12, 0.0  ;;  %v161_v16 = vadd.f32 %v186_v10, %v160_v14  ;;  %v224_v17 = vpop.f32.mrb[3].mxu0 }
 0x11f   :  { %166 = vst [vmem:[#allocation7] sm:$0xff] %v164_v15  ;;  %v165_v18 = vmax.f32 %v161_v16, 0.0 }
 0x121   :  { %167 = vst [vmem:[#allocation7 + $0x8] sm:$0xff] %v165_v18 }
 0x122   :  { %298 = shalt.err (!%p295_p6)
}
 0x123   :  { %s299_s15 = scalar_lea.hbm %s386_s3, 256 }
 0x124   :  { %p300_p7 = scmp.ne.s32.totalorder %s386_s3, %s299_s15  ;;  %p303_p8 = scmp.lt.u32.totalorder %s299_s15, %s386_s3 }
 0x126   :  { %p305_p9 = pnand %p303_p8, %p300_p7 }
 0x128   :  { %308 = shalt.err (!%p305_p9)
}
 0x129   :  { %s322_s20 = smov 128   ;;  %s323_s21 = smov 8  }
 0x12a   :  { %179 = dma.vmem_to_hbm [thread:$0]  %s174_s12, 256, %s386_s3, [#allocation4], %s322_s20, %s322_s20, %s323_s21  }
 0x12b   :  { %313 = dma.done.wait [#allocation4], 256  }
 0x12c   :  { %314 = vsyncadd [#allocation4], 4294967040 }
 0x12d   :  { %183 = vsyncpa [#allocation3], 1 }
 0x12e   :  { %184 = vsyncpa [#allocation6], 1 }
 0x12f   :  { %185 = vsyncpa [#allocation4], 1 }

</bundles_post_ra>
